<compile_context>
chip_gen: v7x
topology: tpu7x:2x2x1
jax: 0.10.0
libtpu: 0.0.40
codegen_flags: <defaults>
</compile_context>

<pallas_src>
import functools
import math

import jax
import jax.numpy as jnp
from jax.experimental import pallas as pl
from jax.experimental.pallas import tpu as pltpu

# ----------------------------- configuration --------------------------------
IN_CHANNELS = 8
HIDDEN_CHANNELS = (16, 16)
OUT_CHANNELS = 8
NUM_CLASSES = 4
POOL_RATIO = 0.5
DEPTH = len(HIDDEN_CHANNELS)
LANES = 128  # lane-dense output / weight-slab width (unmasked stores)


# --------------------------- weight-slab packing -----------------------------
def _pack_weights(arrs):
    """Pack small 2-D f32 arrays into one lane-dense (rows, LANES) slab.

    Each entry starts on an 8-row (sublane) boundary.  Returns the slab and a
    static tuple of (row_offset, rows, cols) used by the kernel to slice it.
    """
    offs, row = [], 0
    for a in arrs:
        r, c = a.shape
        assert c <= LANES, "weight wider than one lane tile"
        offs.append((row, r, c))
        row += -(-r // 8) * 8
    slab = jnp.zeros((max(row, 8), LANES), jnp.float32)
    for a, (o, r, c) in zip(arrs, offs):
        slab = slab.at[o:o + r, :c].set(a.astype(jnp.float32))
    return slab, tuple(offs)


# ------------------------------- fused kernel --------------------------------
def _graph_unet_kernel(adj_ref, x_ref, w_ref, out_ref, *, n, ks, depth, offs):
    f32, bf16 = jnp.float32, jnp.bfloat16

    # ---- unpack the packed weight slab with static slices (one DMA total) --
    it = iter(offs)

    def take():
        o, r, c = next(it)
        return w_ref[o:o + r, 0:c]

    down_w = [take() for _ in range(depth + 1)]
    down_b = [take() for _ in range(depth + 1)]
    pool_p = [take() for _ in range(depth)]
    up_wa = [take() for _ in range(depth)]
    up_wb = [take() for _ in range(depth)]
    up_b = [take() for _ in range(depth)]
    dec_w = take()
    dec_b = take()

    # ---- persistent index grids: int32 only (no f32 iota/mask buffers) -----
    ri = jax.lax.broadcasted_iota(jnp.int32, (n, n), 0)   # row index
    ci = jax.lax.broadcasted_iota(jnp.int32, (n, n), 1)   # col index
    rvec = jax.lax.broadcasted_iota(jnp.int32, (n, 1), 0)  # per-row index

    def adot(a, b, dims=None):
        # Adjacency-type matmul: operands are one-hot / small-integer path
        # counts, exact in bf16 (<= 256); accumulate in f32 on the MXU.
        a16, b16 = a.astype(bf16), b.astype(bf16)
        if dims is None:
            return jnp.dot(a16, b16, preferred_element_type=f32)
        return jax.lax.dot_general(a16, b16, (dims, ((), ())),
                                   preferred_element_type=f32)

    def gcn(a, xw, b, relu, n_valid):
        # GCNConv(improved=True), diag(a) == 0 at every call site:
        #   D^-1/2 (A + 2I) D^-1/2 (X W) + b,     deg = rowsum(A) + 2
        deg = jnp.sum(a, axis=1, keepdims=True) + 2.0
        dinv = jax.lax.rsqrt(deg)
        y = dinv * xw
        out = dinv * (jnp.dot(a, y, preferred_element_type=f32) + 2.0 * y) + b
        if relu:
            out = jnp.maximum(out, 0.0)
        if n_valid < n:
            # keep padded rows exactly zero (bias/ReLU garbage never leaks)
            out = jnp.where(rvec < n_valid, out, 0.0)
        return out

    def augment(a):
        # remove_self_loops -> add_self_loops(1) -> A@A -> remove_self_loops
        # with diag(a) == 0:   offdiag((A + I)^2) = offdiag(A @ A) + 2 A
        aa = adot(a, a)
        return jnp.where(ri == ci, 0.0, aa) + 2.0 * a

    def topk_pool(x, a, p, n_valid, k):
        # TopKPooling: score = (x . p)/||p||, keep top-k, gate = tanh(score).
        # Ranking uses the pre-tanh score (tanh is monotone), ONE rank pass.
        inv_norm = jax.lax.rsqrt(jnp.sum(p * p, axis=1, keepdims=True))  # (1,1)
        s_row = jax.lax.dot_general(                                     # (1,n)
            p, x, (((1,), (1,)), ((), ())),
            preferred_element_type=f32) * inv_norm
        # Bit-exact re-orientation (pure select + add-with-zero): keeps the
        # float tie-break below comparing identical values.
        s_col = jnp.sum(jnp.where(ri == ci, s_row, 0.0),                 # (n,1)
                        axis=1, keepdims=True)
        valid_r = ri < n_valid
        valid_c = ci < n_valid
        # beats[m, j]: valid node m outranks node j (ties broken by index)
        beats = ((s_col > s_row) | ((s_col == s_row) & (ri < ci))) & valid_r
        rank = jnp.sum(beats.astype(f32), axis=0,                        # (1,n)
                       keepdims=True).astype(jnp.int32)
        # One-hot selection matrix: slot r (< k) <-> valid node of rank r.
        P = ((ri == rank) & (ri < k) & valid_c).astype(f32)      # slot x node
        gate = jnp.tanh(jnp.dot(P, s_col, preferred_element_type=f32))  # (n,1)
        x_p = jnp.dot(P, x, preferred_element_type=f32) * gate   # rows>=k -> 0
        a_p = adot(adot(P, a), P, dims=((1,), (1,)))              # P @ A @ P^T
        return x_p, a_p, P

    # ------------------------------ down path -------------------------------
    adj = adj_ref[...]
    x = gcn(adj,
            jnp.dot(x_ref[...], down_w[0], preferred_element_type=f32),
            down_b[0], relu=True, n_valid=n)
    xs, adjs, perms, n_valids = [x], [adj], [], [n]
    nv = n
    for i in range(1, depth + 1):
        adj = augment(adj)
        k = ks[i - 1]
        x_p, adj, P = topk_pool(x, adj, pool_p[i - 1], nv, k)
        x = gcn(adj,
                jnp.dot(x_p, down_w[i], preferred_element_type=f32),
                down_b[i], relu=True, n_valid=k)
        if i < depth:
            xs.append(x)
            adjs.append(adj)
            n_valids.append(k)
        perms.append(P)
        nv = k

    # ------------------------------- up path --------------------------------
    for i in range(depth):
        j = depth - 1 - i
        res, a_j, P = xs[j], adjs[j], perms[j]
        # scatter  up[perm] = x   ==   P^T @ x  (implicit transpose on MXU)
        up = jax.lax.dot_general(P, x, (((0,), (0,)), ((), ())),
                                 preferred_element_type=f32)
        # concat([res, up], -1) @ W  ==  res @ W_top + up @ W_bottom
        xw = (jnp.dot(res, up_wa[i], preferred_element_type=f32)
              + jnp.dot(up, up_wb[i], preferred_element_type=f32))
        x = gcn(a_j, xw, up_b[i], relu=(i < depth - 1), n_valid=n_valids[j])

    # ----------------------- decode (lane-dense store) ----------------------
    out_ref[...] = jnp.dot(x, dec_w, preferred_element_type=f32) + dec_b


# ------------------------------ forward pass ---------------------------------
def graph_unet_forward(params, x_full, edge_index):
    n = x_full.shape[0]
    x = x_full[:, :IN_CHANNELS].astype(jnp.float32)
    edge_weight = jnp.ones((edge_index.shape[1],), jnp.float32)
    # dense adjacency: A[dst, src] = weight of edge src -> dst (no self loops)
    adj = (jnp.zeros((n, n), jnp.float32)
           .at[edge_index[1], edge_index[0]].add(edge_weight))

    # static pooled sizes per level (single graph -> static shapes)
    ks, nv = [], n
    for _ in range(DEPTH):
        nv = int(math.ceil(POOL_RATIO * nv))
        ks.append(nv)
    ks = tuple(ks)

    channels = list(HIDDEN_CHANNELS)
    # pre-split up-conv weights for the concat skip (sum_res=False)
    up_wa = [params["up_w"][i][: channels[DEPTH - i - 1]] for i in range(DEPTH)]
    up_wb = [params["up_w"][i][channels[DEPTH - i - 1]:] for i in range(DEPTH)]

    # lane-dense decode weights: pad NUM_CLASSES -> LANES with zeros
    dec_w = (jnp.zeros((OUT_CHANNELS, LANES), jnp.float32)
             .at[:, :NUM_CLASSES].set(params["dec_w"]))
    dec_b = (jnp.zeros((1, LANES), jnp.float32)
             .at[:, :NUM_CLASSES].set(params["dec_b"][None, :]))

    # pack every small weight into ONE slab -> one DMA instead of ~15
    small = (list(params["down_w"])
             + [b.reshape(1, -1) for b in params["down_b"]]
             + list(params["pool_p"])
             + up_wa + up_wb
             + [b.reshape(1, -1) for b in params["up_b"]]
             + [dec_w, dec_b])
    slab, offs = _pack_weights(small)

    # VMEM budget: resident adjacencies + P's + int32 iotas + temporaries +
    # single-buffered inputs/output, with slack; clamp to a safe window.
    vmem_budget = ((6 + 4 * DEPTH) * n * n * 4
                   + 2 * (slab.size + x.size + n * LANES) * 4
                   + (4 << 20))
    vmem_limit = int(min(max(vmem_budget, 32 << 20), 96 << 20))

    kernel = functools.partial(_graph_unet_kernel, n=n, ks=ks, depth=DEPTH,
                               offs=offs)
    out = pl.pallas_call(
        kernel,
        out_shape=jax.ShapeDtypeStruct((n, LANES), jnp.float32),
        # No grid: single invocation, whole arrays resident in VMEM
        # (single-buffered -- nothing to pipeline for a 1-point grid).
        in_specs=[pl.BlockSpec(memory_space=pltpu.MemorySpace.VMEM)] * 3,
        out_specs=pl.BlockSpec(memory_space=pltpu.MemorySpace.VMEM),
        compiler_params=pltpu.CompilerParams(vmem_limit_bytes=vmem_limit),
    )(adj, x, slab)
    return out[:, :NUM_CLASSES]


# ------------------------------ parameters -----------------------------------
def init_params(key):
    channels = list(HIDDEN_CHANNELS)
    down_dims = [(IN_CHANNELS, channels[0])]
    for i in range(DEPTH):
        c_out = channels[i] if i == DEPTH - 1 else channels[i + 1]
        down_dims.append((channels[i], c_out))
    up_dims = []
    for i in range(DEPTH - 1):
        up_dims.append((2 * channels[DEPTH - i - 1], channels[DEPTH - i - 2]))
    up_dims.append((2 * channels[0], OUT_CHANNELS))

    keys = iter(jax.random.split(key, 64))

    def glorot(shape):
        lim = math.sqrt(6.0 / (shape[0] + shape[1]))
        return jax.random.uniform(next(keys), shape, jnp.float32, -lim, lim)

    return {
        "down_w": [glorot(d) for d in down_dims],
        "down_b": [jnp.zeros((d[1],), jnp.float32) for d in down_dims],
        "up_w": [glorot(d) for d in up_dims],
        "up_b": [jnp.zeros((d[1],), jnp.float32) for d in up_dims],
        "pool_p": [jax.random.uniform(next(keys), (1, channels[i]), jnp.float32,
                                      -1.0 / math.sqrt(channels[i]),
                                      1.0 / math.sqrt(channels[i]))
                   for i in range(DEPTH)],
        "dec_w": glorot((OUT_CHANNELS, NUM_CLASSES)),
        "dec_b": jnp.zeros((NUM_CLASSES,), jnp.float32),
    }


# ---------------------------------- main -------------------------------------
if __name__ == "__main__":
    key = jax.random.PRNGKey(0)
    k_x, k_p = jax.random.split(key)

    N = 16
    x_full = jax.random.normal(k_x, (N, IN_CHANNELS), jnp.float32)

    # undirected ring + chord-3 graph, no self loops
    src = jnp.arange(N, dtype=jnp.int32)
    nbr1 = (src + 1) % N
    nbr3 = (src + 3) % N
    edge_index = jnp.concatenate(
        [jnp.stack([src, nbr1]), jnp.stack([nbr1, src]),
         jnp.stack([src, nbr3]), jnp.stack([nbr3, src])], axis=1).astype(jnp.int32)

    params = init_params(k_p)
    fwd = jax.jit(graph_unet_forward)
    out = fwd(params, x_full, edge_index)
    jax.block_until_ready(out)
    assert out.shape == (N, NUM_CLASSES) and out.dtype == jnp.float32
    assert bool(jnp.all(jnp.isfinite(out)))
    print("KERNEL_OK")
</pallas_src>

<mosaic_0001>
module attributes {stable_mosaic.version = 11 : i64} {
  func.func private @main(%arg0: i32) attributes {dimension_semantics = [#tpu.dimension_semantics<core_parallel>], iteration_bounds = array<i64: 2>, tpu.core_type = #tpu.core_type<sc_scalar_subcore>, window_params = []} {
    return
  }
}

module attributes {stable_mosaic.version = 11 : i64} {
  func.func private @main(%arg0: i32) attributes {dimension_semantics = [#tpu.dimension_semantics<core_parallel>], iteration_bounds = array<i64: 2>, tpu.core_type = #tpu.core_type<sc_scalar_subcore>, window_params = []} {
    return
  }
}

module attributes {stable_mosaic.version = 11 : i64} {
  func.func @_graph_unet_kernel(%arg0: memref<16x16xf32, #tpu.memory_space<vmem>>, %arg1: memref<16x8xf32, #tpu.memory_space<vmem>>, %arg2: memref<176x128xf32, #tpu.memory_space<vmem>>, %arg3: memref<16x128xf32, #tpu.memory_space<vmem>>) attributes {dimension_semantics = [], scalar_prefetch = 0 : i64, scratch_operands = 0 : i64, tpu.core_type = #tpu.core_type<tc>} {
    %c0 = arith.constant 0 : index
    %c0_0 = arith.constant 0 : index
    %0 = vector.load %arg2[%c0, %c0_0] : memref<176x128xf32, #tpu.memory_space<vmem>>, vector<8x16xf32>
    %c8 = arith.constant 8 : index
    %c0_1 = arith.constant 0 : index
    %1 = vector.load %arg2[%c8, %c0_1] : memref<176x128xf32, #tpu.memory_space<vmem>>, vector<16x16xf32>
    %c24 = arith.constant 24 : index
    %c0_2 = arith.constant 0 : index
    %2 = vector.load %arg2[%c24, %c0_2] : memref<176x128xf32, #tpu.memory_space<vmem>>, vector<16x16xf32>
    %c40 = arith.constant 40 : index
    %c0_3 = arith.constant 0 : index
    %3 = vector.load %arg2[%c40, %c0_3] : memref<176x128xf32, #tpu.memory_space<vmem>>, vector<1x16xf32>
    %c48 = arith.constant 48 : index
    %c0_4 = arith.constant 0 : index
    %4 = vector.load %arg2[%c48, %c0_4] : memref<176x128xf32, #tpu.memory_space<vmem>>, vector<1x16xf32>
    %c56 = arith.constant 56 : index
    %c0_5 = arith.constant 0 : index
    %5 = vector.load %arg2[%c56, %c0_5] : memref<176x128xf32, #tpu.memory_space<vmem>>, vector<1x16xf32>
    %c64 = arith.constant 64 : index
    %c0_6 = arith.constant 0 : index
    %6 = vector.load %arg2[%c64, %c0_6] : memref<176x128xf32, #tpu.memory_space<vmem>>, vector<1x16xf32>
    %c72 = arith.constant 72 : index
    %c0_7 = arith.constant 0 : index
    %7 = vector.load %arg2[%c72, %c0_7] : memref<176x128xf32, #tpu.memory_space<vmem>>, vector<1x16xf32>
    %c80 = arith.constant 80 : index
    %c0_8 = arith.constant 0 : index
    %8 = vector.load %arg2[%c80, %c0_8] : memref<176x128xf32, #tpu.memory_space<vmem>>, vector<16x16xf32>
    %c96 = arith.constant 96 : index
    %c0_9 = arith.constant 0 : index
    %9 = vector.load %arg2[%c96, %c0_9] : memref<176x128xf32, #tpu.memory_space<vmem>>, vector<16x8xf32>
    %c112 = arith.constant 112 : index
    %c0_10 = arith.constant 0 : index
    %10 = vector.load %arg2[%c112, %c0_10] : memref<176x128xf32, #tpu.memory_space<vmem>>, vector<16x16xf32>
    %c128 = arith.constant 128 : index
    %c0_11 = arith.constant 0 : index
    %11 = vector.load %arg2[%c128, %c0_11] : memref<176x128xf32, #tpu.memory_space<vmem>>, vector<16x8xf32>
    %c144 = arith.constant 144 : index
    %c0_12 = arith.constant 0 : index
    %12 = vector.load %arg2[%c144, %c0_12] : memref<176x128xf32, #tpu.memory_space<vmem>>, vector<1x16xf32>
    %c152 = arith.constant 152 : index
    %c0_13 = arith.constant 0 : index
    %13 = vector.load %arg2[%c152, %c0_13] : memref<176x128xf32, #tpu.memory_space<vmem>>, vector<1x8xf32>
    %c160 = arith.constant 160 : index
    %c0_14 = arith.constant 0 : index
    %14 = vector.load %arg2[%c160, %c0_14] : memref<176x128xf32, #tpu.memory_space<vmem>>, vector<8x128xf32>
    %c168 = arith.constant 168 : index
    %c0_15 = arith.constant 0 : index
    %15 = vector.load %arg2[%c168, %c0_15] : memref<176x128xf32, #tpu.memory_space<vmem>>, vector<1x128xf32>
    %16 = tpu.iota {dimensions = array<i32: 0>} : vector<16x16xi32>
    %17 = tpu.iota {dimensions = array<i32: 1>} : vector<16x16xi32>
    %18 = tpu.iota {dimensions = array<i32: 0>} : vector<16x1xi32>
    %c0_16 = arith.constant 0 : index
    %c0_17 = arith.constant 0 : index
    %19 = vector.load %arg0[%c0_16, %c0_17] : memref<16x16xf32, #tpu.memory_space<vmem>>, vector<16x16xf32>
    %c0_18 = arith.constant 0 : index
    %c0_19 = arith.constant 0 : index
    %20 = vector.load %arg1[%c0_18, %c0_19] : memref<16x8xf32, #tpu.memory_space<vmem>>, vector<16x8xf32>
    %cst = arith.constant dense<0.000000e+00> : vector<16x16xf32>
    %21 = tpu.matmul %20, %0, %cst {dimension_numbers = #tpu.dot_dimension_numbers<[1], [0], [0], [1], [0, 0, 1, 1], [], []>} : vector<16x8xf32>, vector<8x16xf32>, vector<16x16xf32> -> vector<16x16xf32>
    %cst_20 = arith.constant dense<0.000000e+00> : vector<16xf32>
    %22 = vector.multi_reduction <add>, %19, %cst_20 [1] : vector<16x16xf32> to vector<16xf32>
    %23 = vector.shape_cast %22 : vector<16xf32> to vector<16x1xf32>
    %cst_21 = arith.constant 2.000000e+00 : f32
    %24 = vector.broadcast %cst_21 : f32 to vector<16x1xf32>
    %25 = arith.addf %23, %24 : vector<16x1xf32>
    %26 = math.rsqrt %25 : vector<16x1xf32>
    %27 = vector.broadcast %26 : vector<16x1xf32> to vector<16x16xf32>
    %28 = arith.mulf %27, %21 : vector<16x16xf32>
    %cst_22 = arith.constant dense<0.000000e+00> : vector<16x16xf32>
    %29 = tpu.matmul %19, %28, %cst_22 {dimension_numbers = #tpu.dot_dimension_numbers<[1], [0], [0], [1], [0, 0, 1, 1], [], []>} : vector<16x16xf32>, vector<16x16xf32>, vector<16x16xf32> -> vector<16x16xf32>
    %cst_23 = arith.constant 2.000000e+00 : f32
    %30 = vector.broadcast %cst_23 : f32 to vector<16x16xf32>
    %31 = arith.mulf %30, %28 : vector<16x16xf32>
    %32 = arith.addf %29, %31 : vector<16x16xf32>
    %33 = vector.broadcast %26 : vector<16x1xf32> to vector<16x16xf32>
    %34 = arith.mulf %33, %32 : vector<16x16xf32>
    %35 = vector.broadcast %3 : vector<1x16xf32> to vector<16x16xf32>
    %36 = arith.addf %34, %35 : vector<16x16xf32>
    %cst_24 = arith.constant 0.000000e+00 : f32
    %37 = vector.broadcast %cst_24 : f32 to vector<16x16xf32>
    %38 = arith.maximumf %36, %37 : vector<16x16xf32>
    %39 = arith.truncf %19 : vector<16x16xf32> to vector<16x16xbf16>
    %40 = arith.truncf %19 : vector<16x16xf32> to vector<16x16xbf16>
    %cst_25 = arith.constant dense<0.000000e+00> : vector<16x16xf32>
    %41 = tpu.matmul %39, %40, %cst_25 {dimension_numbers = #tpu.dot_dimension_numbers<[1], [0], [0], [1], [0, 0, 1, 1], [], []>} : vector<16x16xbf16>, vector<16x16xbf16>, vector<16x16xf32> -> vector<16x16xf32>
    %42 = arith.cmpi eq, %16, %17 : vector<16x16xi32>
    %cst_26 = arith.constant 0.000000e+00 : f32
    %43 = vector.broadcast %cst_26 : f32 to vector<16x16xf32>
    %44 = arith.select %42, %43, %41 : vector<16x16xi1>, vector<16x16xf32>
    %cst_27 = arith.constant 2.000000e+00 : f32
    %45 = vector.broadcast %cst_27 : f32 to vector<16x16xf32>
    %46 = arith.mulf %45, %19 : vector<16x16xf32>
    %47 = arith.addf %44, %46 : vector<16x16xf32>
    %48 = arith.mulf %6, %6 : vector<1x16xf32>
    %cst_28 = arith.constant dense<0.000000e+00> : vector<1xf32>
    %49 = vector.multi_reduction <add>, %48, %cst_28 [1] : vector<1x16xf32> to vector<1xf32>
    %50 = vector.shape_cast %49 : vector<1xf32> to vector<1x1xf32>
    %51 = math.rsqrt %50 : vector<1x1xf32>
    %cst_29 = arith.constant dense<0.000000e+00> : vector<1x16xf32>
    %52 = tpu.matmul %6, %38, %cst_29 {dimension_numbers = #tpu.dot_dimension_numbers<[1], [1], [0], [0], [0, 0, 1, 0], [], []>} : vector<1x16xf32>, vector<16x16xf32>, vector<1x16xf32> -> vector<1x16xf32>
    %53 = vector.broadcast %51 : vector<1x1xf32> to vector<1x16xf32>
    %54 = arith.mulf %52, %53 : vector<1x16xf32>
    %55 = arith.cmpi eq, %16, %17 : vector<16x16xi32>
    %cst_30 = arith.constant 0.000000e+00 : f32
    %56 = vector.shape_cast %54 : vector<1x16xf32> to vector<1x16xf32>
    %57 = vector.broadcast %56 : vector<1x16xf32> to vector<16x16xf32>
    %58 = vector.broadcast %cst_30 : f32 to vector<16x16xf32>
    %59 = arith.select %55, %57, %58 : vector<16x16xi1>, vector<16x16xf32>
    %cst_31 = arith.constant dense<0.000000e+00> : vector<16xf32>
    %60 = vector.multi_reduction <add>, %59, %cst_31 [1] : vector<16x16xf32> to vector<16xf32>
    %61 = vector.shape_cast %60 : vector<16xf32> to vector<16x1xf32>
    %c16_i32 = arith.constant 16 : i32
    %62 = vector.broadcast %c16_i32 : i32 to vector<16x16xi32>
    %63 = arith.cmpi slt, %16, %62 : vector<16x16xi32>
    %c16_i32_32 = arith.constant 16 : i32
    %64 = vector.broadcast %c16_i32_32 : i32 to vector<16x16xi32>
    %65 = arith.cmpi slt, %17, %64 : vector<16x16xi32>
    %66 = vector.broadcast %61 : vector<16x1xf32> to vector<16x16xf32>
    %67 = vector.broadcast %54 : vector<1x16xf32> to vector<16x16xf32>
    %68 = arith.cmpf ogt, %66, %67 : vector<16x16xf32>
    %69 = vector.broadcast %61 : vector<16x1xf32> to vector<16x16xf32>
    %70 = vector.broadcast %54 : vector<1x16xf32> to vector<16x16xf32>
    %71 = arith.cmpf oeq, %69, %70 : vector<16x16xf32>
    %72 = arith.cmpi slt, %16, %17 : vector<16x16xi32>
    %73 = arith.andi %71, %72 : vector<16x16xi1>
    %74 = arith.ori %68, %73 : vector<16x16xi1>
    %75 = arith.andi %74, %63 : vector<16x16xi1>
    %76 = arith.extui %75 : vector<16x16xi1> to vector<16x16xi32>
    %77 = arith.sitofp %76 : vector<16x16xi32> to vector<16x16xf32>
    %cst_33 = arith.constant dense<0.000000e+00> : vector<16xf32>
    %78 = vector.multi_reduction <add>, %77, %cst_33 [0] : vector<16x16xf32> to vector<16xf32>
    %79 = vector.shape_cast %78 : vector<16xf32> to vector<1x16xf32>
    %80 = arith.fptosi %79 : vector<1x16xf32> to vector<1x16xi32>
    %81 = vector.broadcast %80 : vector<1x16xi32> to vector<16x16xi32>
    %82 = arith.cmpi eq, %16, %81 : vector<16x16xi32>
    %c8_i32 = arith.constant 8 : i32
    %83 = vector.broadcast %c8_i32 : i32 to vector<16x16xi32>
    %84 = arith.cmpi slt, %16, %83 : vector<16x16xi32>
    %85 = arith.andi %82, %84 : vector<16x16xi1>
    %86 = arith.andi %85, %65 : vector<16x16xi1>
    %87 = arith.extui %86 : vector<16x16xi1> to vector<16x16xi32>
    %88 = arith.sitofp %87 : vector<16x16xi32> to vector<16x16xf32>
    %cst_34 = arith.constant dense<0.000000e+00> : vector<16x1xf32>
    %89 = tpu.matmul %88, %61, %cst_34 {dimension_numbers = #tpu.dot_dimension_numbers<[1], [0], [0], [1], [0, 0, 1, 1], [], []>} : vector<16x16xf32>, vector<16x1xf32>, vector<16x1xf32> -> vector<16x1xf32>
    %90 = math.tanh %89 : vector<16x1xf32>
    %cst_35 = arith.constant dense<0.000000e+00> : vector<16x16xf32>
    %91 = tpu.matmul %88, %38, %cst_35 {dimension_numbers = #tpu.dot_dimension_numbers<[1], [0], [0], [1], [0, 0, 1, 1], [], []>} : vector<16x16xf32>, vector<16x16xf32>, vector<16x16xf32> -> vector<16x16xf32>
    %92 = vector.broadcast %90 : vector<16x1xf32> to vector<16x16xf32>
    %93 = arith.mulf %91, %92 : vector<16x16xf32>
    %94 = arith.truncf %88 : vector<16x16xf32> to vector<16x16xbf16>
    %95 = arith.truncf %47 : vector<16x16xf32> to vector<16x16xbf16>
    %cst_36 = arith.constant dense<0.000000e+00> : vector<16x16xf32>
    %96 = tpu.matmul %94, %95, %cst_36 {dimension_numbers = #tpu.dot_dimension_numbers<[1], [0], [0], [1], [0, 0, 1, 1], [], []>} : vector<16x16xbf16>, vector<16x16xbf16>, vector<16x16xf32> -> vector<16x16xf32>
    %97 = arith.truncf %96 : vector<16x16xf32> to vector<16x16xbf16>
    %98 = arith.truncf %88 : vector<16x16xf32> to vector<16x16xbf16>
    %cst_37 = arith.constant dense<0.000000e+00> : vector<16x16xf32>
    %99 = tpu.matmul %97, %98, %cst_37 {dimension_numbers = #tpu.dot_dimension_numbers<[1], [1], [0], [0], [0, 0, 1, 0], [], []>} : vector<16x16xbf16>, vector<16x16xbf16>, vector<16x16xf32> -> vector<16x16xf32>
    %cst_38 = arith.constant dense<0.000000e+00> : vector<16x16xf32>
    %100 = tpu.matmul %93, %1, %cst_38 {dimension_numbers = #tpu.dot_dimension_numbers<[1], [0], [0], [1], [0, 0, 1, 1], [], []>} : vector<16x16xf32>, vector<16x16xf32>, vector<16x16xf32> -> vector<16x16xf32>
    %cst_39 = arith.constant dense<0.000000e+00> : vector<16xf32>
    %101 = vector.multi_reduction <add>, %99, %cst_39 [1] : vector<16x16xf32> to vector<16xf32>
    %102 = vector.shape_cast %101 : vector<16xf32> to vector<16x1xf32>
    %cst_40 = arith.constant 2.000000e+00 : f32
    %103 = vector.broadcast %cst_40 : f32 to vector<16x1xf32>
    %104 = arith.addf %102, %103 : vector<16x1xf32>
    %105 = math.rsqrt %104 : vector<16x1xf32>
    %106 = vector.broadcast %105 : vector<16x1xf32> to vector<16x16xf32>
    %107 = arith.mulf %106, %100 : vector<16x16xf32>
    %cst_41 = arith.constant dense<0.000000e+00> : vector<16x16xf32>
    %108 = tpu.matmul %99, %107, %cst_41 {dimension_numbers = #tpu.dot_dimension_numbers<[1], [0], [0], [1], [0, 0, 1, 1], [], []>} : vector<16x16xf32>, vector<16x16xf32>, vector<16x16xf32> -> vector<16x16xf32>
    %cst_42 = arith.constant 2.000000e+00 : f32
    %109 = vector.broadcast %cst_42 : f32 to vector<16x16xf32>
    %110 = arith.mulf %109, %107 : vector<16x16xf32>
    %111 = arith.addf %108, %110 : vector<16x16xf32>
    %112 = vector.broadcast %105 : vector<16x1xf32> to vector<16x16xf32>
    %113 = arith.mulf %112, %111 : vector<16x16xf32>
    %114 = vector.broadcast %4 : vector<1x16xf32> to vector<16x16xf32>
    %115 = arith.addf %113, %114 : vector<16x16xf32>
    %cst_43 = arith.constant 0.000000e+00 : f32
    %116 = vector.broadcast %cst_43 : f32 to vector<16x16xf32>
    %117 = arith.maximumf %115, %116 : vector<16x16xf32>
    %c8_i32_44 = arith.constant 8 : i32
    %118 = vector.broadcast %c8_i32_44 : i32 to vector<16x1xi32>
    %119 = arith.cmpi slt, %18, %118 : vector<16x1xi32>
    %cst_45 = arith.constant 0.000000e+00 : f32
    %120 = vector.shape_cast %119 : vector<16x1xi1> to vector<16x1xi1>
    %121 = vector.broadcast %120 : vector<16x1xi1> to vector<16x16xi1>
    %122 = vector.broadcast %cst_45 : f32 to vector<16x16xf32>
    %123 = arith.select %121, %117, %122 : vector<16x16xi1>, vector<16x16xf32>
    %124 = arith.truncf %99 : vector<16x16xf32> to vector<16x16xbf16>
    %125 = arith.truncf %99 : vector<16x16xf32> to vector<16x16xbf16>
    %cst_46 = arith.constant dense<0.000000e+00> : vector<16x16xf32>
    %126 = tpu.matmul %124, %125, %cst_46 {dimension_numbers = #tpu.dot_dimension_numbers<[1], [0], [0], [1], [0, 0, 1, 1], [], []>} : vector<16x16xbf16>, vector<16x16xbf16>, vector<16x16xf32> -> vector<16x16xf32>
    %127 = arith.cmpi eq, %16, %17 : vector<16x16xi32>
    %cst_47 = arith.constant 0.000000e+00 : f32
    %128 = vector.broadcast %cst_47 : f32 to vector<16x16xf32>
    %129 = arith.select %127, %128, %126 : vector<16x16xi1>, vector<16x16xf32>
    %cst_48 = arith.constant 2.000000e+00 : f32
    %130 = vector.broadcast %cst_48 : f32 to vector<16x16xf32>
    %131 = arith.mulf %130, %99 : vector<16x16xf32>
    %132 = arith.addf %129, %131 : vector<16x16xf32>
    %133 = arith.mulf %7, %7 : vector<1x16xf32>
    %cst_49 = arith.constant dense<0.000000e+00> : vector<1xf32>
    %134 = vector.multi_reduction <add>, %133, %cst_49 [1] : vector<1x16xf32> to vector<1xf32>
    %135 = vector.shape_cast %134 : vector<1xf32> to vector<1x1xf32>
    %136 = math.rsqrt %135 : vector<1x1xf32>
    %cst_50 = arith.constant dense<0.000000e+00> : vector<1x16xf32>
    %137 = tpu.matmul %7, %123, %cst_50 {dimension_numbers = #tpu.dot_dimension_numbers<[1], [1], [0], [0], [0, 0, 1, 0], [], []>} : vector<1x16xf32>, vector<16x16xf32>, vector<1x16xf32> -> vector<1x16xf32>
    %138 = vector.broadcast %136 : vector<1x1xf32> to vector<1x16xf32>
    %139 = arith.mulf %137, %138 : vector<1x16xf32>
    %140 = arith.cmpi eq, %16, %17 : vector<16x16xi32>
    %cst_51 = arith.constant 0.000000e+00 : f32
    %141 = vector.shape_cast %139 : vector<1x16xf32> to vector<1x16xf32>
    %142 = vector.broadcast %141 : vector<1x16xf32> to vector<16x16xf32>
    %143 = vector.broadcast %cst_51 : f32 to vector<16x16xf32>
    %144 = arith.select %140, %142, %143 : vector<16x16xi1>, vector<16x16xf32>
    %cst_52 = arith.constant dense<0.000000e+00> : vector<16xf32>
    %145 = vector.multi_reduction <add>, %144, %cst_52 [1] : vector<16x16xf32> to vector<16xf32>
    %146 = vector.shape_cast %145 : vector<16xf32> to vector<16x1xf32>
    %c8_i32_53 = arith.constant 8 : i32
    %147 = vector.broadcast %c8_i32_53 : i32 to vector<16x16xi32>
    %148 = arith.cmpi slt, %16, %147 : vector<16x16xi32>
    %c8_i32_54 = arith.constant 8 : i32
    %149 = vector.broadcast %c8_i32_54 : i32 to vector<16x16xi32>
    %150 = arith.cmpi slt, %17, %149 : vector<16x16xi32>
    %151 = vector.broadcast %146 : vector<16x1xf32> to vector<16x16xf32>
    %152 = vector.broadcast %139 : vector<1x16xf32> to vector<16x16xf32>
    %153 = arith.cmpf ogt, %151, %152 : vector<16x16xf32>
    %154 = vector.broadcast %146 : vector<16x1xf32> to vector<16x16xf32>
    %155 = vector.broadcast %139 : vector<1x16xf32> to vector<16x16xf32>
    %156 = arith.cmpf oeq, %154, %155 : vector<16x16xf32>
    %157 = arith.cmpi slt, %16, %17 : vector<16x16xi32>
    %158 = arith.andi %156, %157 : vector<16x16xi1>
    %159 = arith.ori %153, %158 : vector<16x16xi1>
    %160 = arith.andi %159, %148 : vector<16x16xi1>
    %161 = arith.extui %160 : vector<16x16xi1> to vector<16x16xi32>
    %162 = arith.sitofp %161 : vector<16x16xi32> to vector<16x16xf32>
    %cst_55 = arith.constant dense<0.000000e+00> : vector<16xf32>
    %163 = vector.multi_reduction <add>, %162, %cst_55 [0] : vector<16x16xf32> to vector<16xf32>
    %164 = vector.shape_cast %163 : vector<16xf32> to vector<1x16xf32>
    %165 = arith.fptosi %164 : vector<1x16xf32> to vector<1x16xi32>
    %166 = vector.broadcast %165 : vector<1x16xi32> to vector<16x16xi32>
    %167 = arith.cmpi eq, %16, %166 : vector<16x16xi32>
    %c4_i32 = arith.constant 4 : i32
    %168 = vector.broadcast %c4_i32 : i32 to vector<16x16xi32>
    %169 = arith.cmpi slt, %16, %168 : vector<16x16xi32>
    %170 = arith.andi %167, %169 : vector<16x16xi1>
    %171 = arith.andi %170, %150 : vector<16x16xi1>
    %172 = arith.extui %171 : vector<16x16xi1> to vector<16x16xi32>
    %173 = arith.sitofp %172 : vector<16x16xi32> to vector<16x16xf32>
    %cst_56 = arith.constant dense<0.000000e+00> : vector<16x1xf32>
    %174 = tpu.matmul %173, %146, %cst_56 {dimension_numbers = #tpu.dot_dimension_numbers<[1], [0], [0], [1], [0, 0, 1, 1], [], []>} : vector<16x16xf32>, vector<16x1xf32>, vector<16x1xf32> -> vector<16x1xf32>
    %175 = math.tanh %174 : vector<16x1xf32>
    %cst_57 = arith.constant dense<0.000000e+00> : vector<16x16xf32>
    %176 = tpu.matmul %173, %123, %cst_57 {dimension_numbers = #tpu.dot_dimension_numbers<[1], [0], [0], [1], [0, 0, 1, 1], [], []>} : vector<16x16xf32>, vector<16x16xf32>, vector<16x16xf32> -> vector<16x16xf32>
    %177 = vector.broadcast %175 : vector<16x1xf32> to vector<16x16xf32>
    %178 = arith.mulf %176, %177 : vector<16x16xf32>
    %179 = arith.truncf %173 : vector<16x16xf32> to vector<16x16xbf16>
    %180 = arith.truncf %132 : vector<16x16xf32> to vector<16x16xbf16>
    %cst_58 = arith.constant dense<0.000000e+00> : vector<16x16xf32>
    %181 = tpu.matmul %179, %180, %cst_58 {dimension_numbers = #tpu.dot_dimension_numbers<[1], [0], [0], [1], [0, 0, 1, 1], [], []>} : vector<16x16xbf16>, vector<16x16xbf16>, vector<16x16xf32> -> vector<16x16xf32>
    %182 = arith.truncf %181 : vector<16x16xf32> to vector<16x16xbf16>
    %183 = arith.truncf %173 : vector<16x16xf32> to vector<16x16xbf16>
    %cst_59 = arith.constant dense<0.000000e+00> : vector<16x16xf32>
    %184 = tpu.matmul %182, %183, %cst_59 {dimension_numbers = #tpu.dot_dimension_numbers<[1], [1], [0], [0], [0, 0, 1, 0], [], []>} : vector<16x16xbf16>, vector<16x16xbf16>, vector<16x16xf32> -> vector<16x16xf32>
    %cst_60 = arith.constant dense<0.000000e+00> : vector<16x16xf32>
    %185 = tpu.matmul %178, %2, %cst_60 {dimension_numbers = #tpu.dot_dimension_numbers<[1], [0], [0], [1], [0, 0, 1, 1], [], []>} : vector<16x16xf32>, vector<16x16xf32>, vector<16x16xf32> -> vector<16x16xf32>
    %cst_61 = arith.constant dense<0.000000e+00> : vector<16xf32>
    %186 = vector.multi_reduction <add>, %184, %cst_61 [1] : vector<16x16xf32> to vector<16xf32>
    %187 = vector.shape_cast %186 : vector<16xf32> to vector<16x1xf32>
    %cst_62 = arith.constant 2.000000e+00 : f32
    %188 = vector.broadcast %cst_62 : f32 to vector<16x1xf32>
    %189 = arith.addf %187, %188 : vector<16x1xf32>
    %190 = math.rsqrt %189 : vector<16x1xf32>
    %191 = vector.broadcast %190 : vector<16x1xf32> to vector<16x16xf32>
    %192 = arith.mulf %191, %185 : vector<16x16xf32>
    %cst_63 = arith.constant dense<0.000000e+00> : vector<16x16xf32>
    %193 = tpu.matmul %184, %192, %cst_63 {dimension_numbers = #tpu.dot_dimension_numbers<[1], [0], [0], [1], [0, 0, 1, 1], [], []>} : vector<16x16xf32>, vector<16x16xf32>, vector<16x16xf32> -> vector<16x16xf32>
    %cst_64 = arith.constant 2.000000e+00 : f32
    %194 = vector.broadcast %cst_64 : f32 to vector<16x16xf32>
    %195 = arith.mulf %194, %192 : vector<16x16xf32>
    %196 = arith.addf %193, %195 : vector<16x16xf32>
    %197 = vector.broadcast %190 : vector<16x1xf32> to vector<16x16xf32>
    %198 = arith.mulf %197, %196 : vector<16x16xf32>
    %199 = vector.broadcast %5 : vector<1x16xf32> to vector<16x16xf32>
    %200 = arith.addf %198, %199 : vector<16x16xf32>
    %cst_65 = arith.constant 0.000000e+00 : f32
    %201 = vector.broadcast %cst_65 : f32 to vector<16x16xf32>
    %202 = arith.maximumf %200, %201 : vector<16x16xf32>
    %c4_i32_66 = arith.constant 4 : i32
    %203 = vector.broadcast %c4_i32_66 : i32 to vector<16x1xi32>
    %204 = arith.cmpi slt, %18, %203 : vector<16x1xi32>
    %cst_67 = arith.constant 0.000000e+00 : f32
    %205 = vector.shape_cast %204 : vector<16x1xi1> to vector<16x1xi1>
    %206 = vector.broadcast %205 : vector<16x1xi1> to vector<16x16xi1>
    %207 = vector.broadcast %cst_67 : f32 to vector<16x16xf32>
    %208 = arith.select %206, %202, %207 : vector<16x16xi1>, vector<16x16xf32>
    %cst_68 = arith.constant dense<0.000000e+00> : vector<16x16xf32>
    %209 = tpu.matmul %173, %208, %cst_68 {dimension_numbers = #tpu.dot_dimension_numbers<[0], [0], [1], [1], [0, 1, 1, 1], [], []>} : vector<16x16xf32>, vector<16x16xf32>, vector<16x16xf32> -> vector<16x16xf32>
    %cst_69 = arith.constant dense<0.000000e+00> : vector<16x16xf32>
    %210 = tpu.matmul %123, %8, %cst_69 {dimension_numbers = #tpu.dot_dimension_numbers<[1], [0], [0], [1], [0, 0, 1, 1], [], []>} : vector<16x16xf32>, vector<16x16xf32>, vector<16x16xf32> -> vector<16x16xf32>
    %cst_70 = arith.constant dense<0.000000e+00> : vector<16x16xf32>
    %211 = tpu.matmul %209, %10, %cst_70 {dimension_numbers = #tpu.dot_dimension_numbers<[1], [0], [0], [1], [0, 0, 1, 1], [], []>} : vector<16x16xf32>, vector<16x16xf32>, vector<16x16xf32> -> vector<16x16xf32>
    %212 = arith.addf %210, %211 : vector<16x16xf32>
    %cst_71 = arith.constant dense<0.000000e+00> : vector<16xf32>
    %213 = vector.multi_reduction <add>, %99, %cst_71 [1] : vector<16x16xf32> to vector<16xf32>
    %214 = vector.shape_cast %213 : vector<16xf32> to vector<16x1xf32>
    %cst_72 = arith.constant 2.000000e+00 : f32
    %215 = vector.broadcast %cst_72 : f32 to vector<16x1xf32>
    %216 = arith.addf %214, %215 : vector<16x1xf32>
    %217 = math.rsqrt %216 : vector<16x1xf32>
    %218 = vector.broadcast %217 : vector<16x1xf32> to vector<16x16xf32>
    %219 = arith.mulf %218, %212 : vector<16x16xf32>
    %cst_73 = arith.constant dense<0.000000e+00> : vector<16x16xf32>
    %220 = tpu.matmul %99, %219, %cst_73 {dimension_numbers = #tpu.dot_dimension_numbers<[1], [0], [0], [1], [0, 0, 1, 1], [], []>} : vector<16x16xf32>, vector<16x16xf32>, vector<16x16xf32> -> vector<16x16xf32>
    %cst_74 = arith.constant 2.000000e+00 : f32
    %221 = vector.broadcast %cst_74 : f32 to vector<16x16xf32>
    %222 = arith.mulf %221, %219 : vector<16x16xf32>
    %223 = arith.addf %220, %222 : vector<16x16xf32>
    %224 = vector.broadcast %217 : vector<16x1xf32> to vector<16x16xf32>
    %225 = arith.mulf %224, %223 : vector<16x16xf32>
    %226 = vector.broadcast %12 : vector<1x16xf32> to vector<16x16xf32>
    %227 = arith.addf %225, %226 : vector<16x16xf32>
    %cst_75 = arith.constant 0.000000e+00 : f32
    %228 = vector.broadcast %cst_75 : f32 to vector<16x16xf32>
    %229 = arith.maximumf %227, %228 : vector<16x16xf32>
    %c8_i32_76 = arith.constant 8 : i32
    %230 = vector.broadcast %c8_i32_76 : i32 to vector<16x1xi32>
    %231 = arith.cmpi slt, %18, %230 : vector<16x1xi32>
    %cst_77 = arith.constant 0.000000e+00 : f32
    %232 = vector.shape_cast %231 : vector<16x1xi1> to vector<16x1xi1>
    %233 = vector.broadcast %232 : vector<16x1xi1> to vector<16x16xi1>
    %234 = vector.broadcast %cst_77 : f32 to vector<16x16xf32>
    %235 = arith.select %233, %229, %234 : vector<16x16xi1>, vector<16x16xf32>
    %cst_78 = arith.constant dense<0.000000e+00> : vector<16x16xf32>
    %236 = tpu.matmul %88, %235, %cst_78 {dimension_numbers = #tpu.dot_dimension_numbers<[0], [0], [1], [1], [0, 1, 1, 1], [], []>} : vector<16x16xf32>, vector<16x16xf32>, vector<16x16xf32> -> vector<16x16xf32>
    %cst_79 = arith.constant dense<0.000000e+00> : vector<16x8xf32>
    %237 = tpu.matmul %38, %9, %cst_79 {dimension_numbers = #tpu.dot_dimension_numbers<[1], [0], [0], [1], [0, 0, 1, 1], [], []>} : vector<16x16xf32>, vector<16x8xf32>, vector<16x8xf32> -> vector<16x8xf32>
    %cst_80 = arith.constant dense<0.000000e+00> : vector<16x8xf32>
    %238 = tpu.matmul %236, %11, %cst_80 {dimension_numbers = #tpu.dot_dimension_numbers<[1], [0], [0], [1], [0, 0, 1, 1], [], []>} : vector<16x16xf32>, vector<16x8xf32>, vector<16x8xf32> -> vector<16x8xf32>
    %239 = arith.addf %237, %238 : vector<16x8xf32>
    %cst_81 = arith.constant dense<0.000000e+00> : vector<16xf32>
    %240 = vector.multi_reduction <add>, %19, %cst_81 [1] : vector<16x16xf32> to vector<16xf32>
    %241 = vector.shape_cast %240 : vector<16xf32> to vector<16x1xf32>
    %cst_82 = arith.constant 2.000000e+00 : f32
    %242 = vector.broadcast %cst_82 : f32 to vector<16x1xf32>
    %243 = arith.addf %241, %242 : vector<16x1xf32>
    %244 = math.rsqrt %243 : vector<16x1xf32>
    %245 = vector.broadcast %244 : vector<16x1xf32> to vector<16x8xf32>
    %246 = arith.mulf %245, %239 : vector<16x8xf32>
    %cst_83 = arith.constant dense<0.000000e+00> : vector<16x8xf32>
    %247 = tpu.matmul %19, %246, %cst_83 {dimension_numbers = #tpu.dot_dimension_numbers<[1], [0], [0], [1], [0, 0, 1, 1], [], []>} : vector<16x16xf32>, vector<16x8xf32>, vector<16x8xf32> -> vector<16x8xf32>
    %cst_84 = arith.constant 2.000000e+00 : f32
    %248 = vector.broadcast %cst_84 : f32 to vector<16x8xf32>
    %249 = arith.mulf %248, %246 : vector<16x8xf32>
    %250 = arith.addf %247, %249 : vector<16x8xf32>
    %251 = vector.broadcast %244 : vector<16x1xf32> to vector<16x8xf32>
    %252 = arith.mulf %251, %250 : vector<16x8xf32>
    %253 = vector.broadcast %13 : vector<1x8xf32> to vector<16x8xf32>
    %254 = arith.addf %252, %253 : vector<16x8xf32>
    %cst_85 = arith.constant dense<0.000000e+00> : vector<16x128xf32>
    %255 = tpu.matmul %254, %14, %cst_85 {dimension_numbers = #tpu.dot_dimension_numbers<[1], [0], [0], [1], [0, 0, 1, 1], [], []>} : vector<16x8xf32>, vector<8x128xf32>, vector<16x128xf32> -> vector<16x128xf32>
    %256 = vector.broadcast %15 : vector<1x128xf32> to vector<16x128xf32>
    %257 = arith.addf %255, %256 : vector<16x128xf32>
    %c0_86 = arith.constant 0 : index
    %c0_87 = arith.constant 0 : index
    %258 = vector.load %arg3[%c0_86, %c0_87] : memref<16x128xf32, #tpu.memory_space<vmem>>, vector<16x128xf32>
    tpu.vector_store %arg3[%c0_86, %c0_87], %257 {strides = array<i32>} : memref<16x128xf32, #tpu.memory_space<vmem>>, vector<16x128xf32>,
    return
  }
}

</mosaic_0001>

<bundles_post_ra>
// kernel: graph_unet_forward.1
= control target key start
LH: loop header
LB: loop body
LE: loop exit
PB: predicated region body
PF: predicated region fallthrough
CT: control target
= control target key end

     0   :  { %8 = vsyncpa [#allocation3], 0  ;;  %s2779_s12 = smov [#allocation2]   ;;  %s3135_s0 = inlined_call_operand.hbm [shape: f32[16,16], index: 0, kind: input, shape index: {}]   ;;  %s3136_s1 = inlined_call_operand.vmem [shape: f32[16,8], index: 1, kind: input, shape index: {}]   ;;  %s3137_s2 = inlined_call_operand.vmem [shape: f32[176,128], index: 2, kind: input, shape index: {}]   ;;  %s3138_s3 = inlined_call_operand.vmem [shape: f32[16,128], index: 3, kind: output, shape index: {}]  }
   0x1   :  { %s14_s13 = sshll.u32 %s2779_s12, 4  ;;  %s2755_s16 = scalar_lea.hbm %s3135_s0, 256  ;;  %s15_s13 = int_to_ptr.vmem [resolvable:$true] %s14_s13 }
   0x2   :  { %p2756_p0 = scmp.ne.s32.totalorder %s3135_s0, %s2755_s16  ;;  %p2759_p1 = scmp.lt.u32.totalorder %s2755_s16, %s3135_s0 }
   0x4   :  { %p2761_p2 = pnand %p2759_p1, %p2756_p0 }
   0x6   :  { %2764 = shalt.err (!%p2761_p2)
}
   0x7   :  { %s2765_s21 = scalar_lea.vmem %s15_s13, 256  ;;  %p2770_p4 = scmp.lt.s32.totalorder %s15_s13, %s15_s13 }
   0x8   :  { %p2766_p3 = scmp.ne.s32.totalorder %s15_s13, %s2765_s21  ;;  %p2771_p5 = scmp.lt.s32.totalorder %s2765_s21, %s2765_s21 }
   0xa   :  { %p2772_p6 = por %p2771_p5, %p2770_p4 }
   0xc   :  { %p2773_p7 = pnand %p2772_p6, %p2766_p3 }
   0xe   :  { %2776 = shalt.err (!%p2773_p7)
}
   0xf   :  { %s2780_s22 = smov 128   ;;  %s2781_s23 = smov 8  }
  0x10   :  { %20 = dma.hbm_to_vmem [thread:$0]  %s3135_s0, 256, %s15_s13, [#allocation3], %s2780_s22, %s2780_s22, %s2781_s23  }
  0x11   :  { %2777 = dma.done.wait [#allocation3], 256  }
  0x12   :  { %2778 = vsyncadd [#allocation3], 4294967040  ;;  %vm60_vm0 = vcmask 64512   ;;  %vm142_vm1 = vcmask 130048   ;;  %v29_v0 = vld [vmem:[%s3137_s2] sm:$0xff]  ;;  %v59_v2 = vld [vmem:[%s3136_s1 + $0x8] sm:$0xff]  ;;  %v51_v39 = vlaneseq }
  0x13   :  { %v58_v1 = vld [vmem:[%s3136_s1] sm:$0xff]  ;;  %2483 = vmatprep.subr.mxu0 %v29_v0  ;;  %v2830_v4 = vld [vmem:[#allocation2 + $0x8] sm:$0xff]  ;;  %v2782_v18 = vmov 0.0|0.0   ;;  %vm2783_vm2 = vmmov 0   ;;  %v2784_v19 = vmov 0.0   ;;  %vm302_vm3 = vcmask 122880   ;;  %vm2660_vm4 = vmpackc.low %vm142_vm1, %vm142_vm1 }
  0x14   :  { %2485 = vmatprep.mubr.msk.f32.mxu0 %vm60_vm0, %v58_v1  ;;  %v2828_v3 = vld [vmem:[#allocation2] sm:$0xff]  ;;  %2484 = vmatpush3.msra.mxu0 %v29_v0  ;;  %v146_v6 = vsel %vm142_vm1, %v2830_v4, 0.0  ;;  %v2343_v29 = vld [vmem:[%s3137_s2 + $0x28] ss:$0 sm:$0xff]  ;;  %v2878_v40 = vshrl.u32 %v51_v39, 7  ;;  %v2883_v43 = vand.u32 127, %v51_v39 }
  0x15   :  { %v143_v5 = vsel %vm142_vm1, %v2828_v3, 0.0  ;;  %2492 = vmatprep.mubr.msk.f32.mxu1 %vm142_vm1, %v2828_v3  ;;  %2486 = vmatmul.mubr.msk.f32.vlgmr.msra.gmra.mrb[0].mxu0 %vm60_vm0, %v59_v2  ;;  %v37_v20 = vld [vmem:[%s3137_s2 + $0x40] sm:$0x1]  ;;  %v248_v22 = vpack.c.bf16 %v2830_v4, %v2828_v3  ;;  %v297_v54 = vmul.f32 2.0, %v2828_v3  ;;  %v298_v55 = vmul.f32 2.0, %v2830_v4 }
  0x16   :  { %144 = vadd.xlane.f32.xlu0 %v143_v5  ;;  %2495 = vmatprep.subr.bf16.mxu0 %v2784_v19  ;;  %v301_v21 = vmul.f32 %v37_v20, %v37_v20  ;;  %v2881_v42 = vadd.s32 8, %v2878_v40  ;;  %v389_v44 = vsub.s32 0, %v2878_v40  ;;  %vm293_vm6 = vcmp.eq.s32.totalorder %v2878_v40, %v2883_v43 }
  0x17   :  { %2497 = vmatprep.mubr.msk.bf16.mxu0 %vm2783_vm2, %v2784_v19  ;;  %2496 = vmatpush3.bf16.msra.mxu0 %v248_v22  ;;  %vm406_vm10 = vcmp.lt.s32.totalorder %v2878_v40, %v2883_v43 }
  0x18   :  { %v303_v23 = vsel %vm302_vm3, %v301_v21, 0.0  ;;  %vm294_vm5 = vcmp.eq.s32.totalorder %v2881_v42, %v2883_v43  ;;  %vm407_vm7 = vcmp.lt.s32.totalorder %v2881_v42, %v2883_v43 }
  0x19   :  { %304 = vadd.xlane.f32.xlu1 %v303_v23 }
  0x1a   :  { %147 = vadd.xlane.f32.xlu0 %v146_v6  ;;  %2498 = vmatmul.mubr.msk.bf16.vlgmr.msra.gmra.mrb[4].mxu0 %vm142_vm1, %v248_v22 }
  0xa3   :  { %v145_v7 = vpop.xlane.xlu0 %144 }
  0xa4   :  { %v149_v10 = vadd.f32 2.0, %v145_v7 }
  0xa6   :  { %v305_v38 = vpop.xlane.xlu1 %304 }
  0xa7   :  { %v148_v8 = vpop.xlane.xlu0 %147 }
  0xa8   :  { %v150_v9 = vadd.f32 2.0, %v148_v8 }
  0xaa   :  { %2731 = vrsqrt.f32 %v150_v9 }
  0xab   :  { %2733 = vrsqrt.f32 %v149_v10 }
  0xac   :  { %2735 = vrsqrt.f32 %v305_v38 }
  0xb4   :  { %v2839_v11 = vpop.eup %2731 }
  0xb5   :  { %v2841_v13 = vpop.eup %2733 }
  0xb6   :  { %v2736_v41 = vpop.eup %2735 }
  0xe8   :  { %v2487_v12 = vpop.f32.mrb[0].mxu0 }
  0xe9   :  { %v154_v14 = vmul.f32 %v2839_v11, %v2487_v12  ;;  %v133_v15 = vpop.f32.mrb[1].mxu0 }
  0xea   :  { %v153_v16 = vmul.f32 %v2841_v13, %v133_v15 }
  0xeb   :  { %v156_v24 = vmul.f32 2.0, %v154_v14 }
  0xec   :  { %v2654_v17 = vpack.c.bf16 %v154_v14, %v153_v16  ;;  %v155_v26 = vmul.f32 2.0, %v153_v16 }
  0xed   :  { %v286_v53 = vpop.f32.mrb[4].mxu0 }
  0xee   :  { %2655 = vmatprep.subr.bf16.mxu1 %v2654_v17  ;;  %v295_v56 = vsel %vm293_vm6, 0.0, %v286_v53  ;;  %v2499_v57 = vpop.f32.mrb[5].mxu0 }
  0xef   :  { %2657 = vmatpush3.bf16.msra.mxu1 %v2654_v17  ;;  %v299_v58 = vadd.f32 %v297_v54, %v295_v56  ;;  %v289_v59 = vpop.f32.mrb[6].mxu0 }
  0xf0   :  { %2658 = vmatprep.subr.bf16.mxu1 %v2782_v18  ;;  %v296_v60 = vsel %vm294_vm5, 0.0, %v289_v59  ;;  %v2500_v61 = vpop.f32.mrb[7].mxu0 }
  0xf1   :  { %v300_v62 = vadd.f32 %v298_v55, %v296_v60 }
  0xf2   :  { %2493 = vmatmul.mubr.msk.f32.vlgmr.msra.gmra.mrb[0].mxu1 %vm142_vm1, %v2830_v4 }
  0xf3   :  { %2505 = vmatprep.mubr.msk.f32.mxu1 %vm2783_vm2, %v2784_v19  ;;  %v611_v63 = vpack.c.bf16 %v300_v62, %v299_v58 }
 0x1c5   :  { %v2494_v25 = vpop.f32.mrb[0].mxu1 }
 0x1c6   :  { %v235_v27 = vadd.f32 %v2494_v25, %v156_v24  ;;  %v229_v28 = vpop.f32.mrb[1].mxu1  ;;  %v2785_v24 = vmov 0  }
 0x1c7   :  { %v230_v30 = vadd.f32 %v229_v28, %v155_v26  ;;  %2730 = vset.pattern.permute.xlu0 %v2785_v24  ;;  %2729 = vset.pattern.permute.xlu1 %v2785_v24 }
 0x1c8   :  { %v239_v31 = vmul.f32 %v2839_v11, %v235_v27 }
 0x1c9   :  { %v238_v32 = vmul.f32 %v2841_v13, %v230_v30 }
 0x1ca   :  { %v2864_v33 = vadd.f32 %v2343_v29, %v239_v31 }
 0x1cb   :  { %v2866_v34 = vadd.f32 %v2343_v29, %v238_v32  ;;  %v30_v32 = vld [vmem:[%s3137_s2 + $0x8] sm:$0xff] }
 0x1cc   :  { %v247_v35 = vmax.f32 %v2864_v33, 0.0 }
 0x1cd   :  { %v246_v36 = vmax.f32 %v2866_v34, 0.0  ;;  %v49_v34 = vld [vmem:[%s3137_s2 + $0xa0] sm:$0xff] }
 0x1cf   :  { %v2659_v37 = vpack.c.bf16 %v247_v35, %v246_v36 }
 0x1d1   :  { %2661 = vmatpush3.bf16.xpose.msk.msra.mxu1 %vm2660_vm4, %v2659_v37 }
 0x1d2   :  { %2667 = vmatprep.subr.bf16.mxu1 %v2659_v37 }
 0x1d8   :  { %2506 = vmatmul.mubr.msk.f32.vlgmr.msra.gmra.mrb[2].mxu1 %vm142_vm1, %v37_v20 }
 0x1d9   :  { %2669 = vmatpush3.bf16.msra.mxu1 %v2659_v37  ;;  %v31_v37 = vld [vmem:[%s3137_s2 + $0x10] sm:$0xff] }
 0x1da   :  { %2528 = vmatprep.subr.bf16.mxu1 %v2784_v19 }
 0x2ab   :  { %v382_v45 = vpop.f32.mrb[2].mxu1 }
 0x2ac   :  { %v386_v46 = vmul.f32 %v2736_v41, %v382_v45  ;;  %v2507_v47 = vpop.f32.mrb[3].mxu1  ;;  %v2670_v41 = vpack.c.bf16 %v31_v37, %v30_v32 }
 0x2ae   :  { %v390_v48 = vrot.slane %v386_v46, %v389_v44 }
 0x2b0   :  { %v392_v49 = vsel %vm294_vm5, %v390_v48, 0.0  ;;  %v391_v50 = vsel %vm293_vm6, %v390_v48, 0.0 }
 0x2b1   :  { %v396_v51 = vsel %vm142_vm1, %v392_v49, 0.0  ;;  %v393_v52 = vsel %vm142_vm1, %v391_v50, 0.0 }
 0x2b2   :  { %397 = vadd.xlane.f32.xlu0 %v396_v51  ;;  %394 = vadd.xlane.f32.xlu1 %v393_v52 }
 0x33f   :  { %v398_v0 = vpop.xlane.xlu0 %397  ;;  %v395_v1 = vpop.xlane.xlu1 %394 }
 0x340   :  { %vm403_vm8 = vcmp.gt.f32.partialorder %v398_v0, %v390_v48  ;;  %vm405_vm9 = vcmp.eq.f32.partialorder %v398_v0, %v390_v48  ;;  %vm404_vm11 = vcmp.eq.f32.partialorder %v395_v1, %v390_v48  ;;  %vm402_vm13 = vcmp.gt.f32.partialorder %v395_v1, %v390_v48 }
 0x341   :  { %vm409_vm12 = vmand %vm405_vm9, %vm407_vm7  ;;  %v2662_v2 = vpack.c.bf16 %v398_v0, %v395_v1  ;;  %vm401_vm7 = vcmp.lt.s32.totalorder %v2883_v43, 16 }
 0x342   :  { %vm411_vm14 = vmor %vm403_vm8, %vm409_vm12 }
 0x343   :  { %v2349_v5 = vsel %vm411_vm14, 1.0, %v2784_v19  ;;  %vm408_vm15 = vmand %vm404_vm11, %vm406_vm10  ;;  %2663 = vmatprep.subr.bf16.mxu0 %v2662_v2 }
 0x344   :  { %v419_v6 = vsel %vm142_vm1, %v2349_v5, 0.0  ;;  %vm410_vm4 = vmor %vm402_vm13, %vm408_vm15  ;;  %2665 = vmatpush3.bf16.msra.mxu0 %v2662_v2 }
 0x345   :  { %v2348_v7 = vsel %vm410_vm4, 1.0, %v2784_v19  ;;  %2522 = vmatprep.subr.bf16.mxu0 %v2784_v19 }
 0x346   :  { %v418_v8 = vsel %vm142_vm1, %v2348_v7, 0.0 }
 0x347   :  { %v420_v9 = vadd.f32 %v419_v6, %v418_v8 }
 0x349   :  { %v421_v10 = vrot.slane %v420_v9, 4 }
 0x34b   :  { %v422_v12 = vadd.f32 %v421_v10, %v420_v9 }
 0x34d   :  { %v423_v14 = vrot.slane %v422_v12, 2 }
 0x34f   :  { %v424_v15 = vadd.f32 %v423_v14, %v422_v12 }
 0x351   :  { %v425_v16 = vrot.slane %v424_v15, 1 }
 0x353   :  { %v426_v17 = vadd.f32 %v425_v16, %v424_v15 }
 0x355   :  { %v2718_v18 = vtrunc.f32 %v426_v17 }
 0x357   :  { %v2719_v20 = vcvt.f32.s32 %v2718_v18 }
 0x359   :  { %vm428_vm8 = vcmp.eq.s32.totalorder %v2878_v40, %v2719_v20 }
 0x35a   :  { %vm434_vm9 = vmand %vm428_vm8, %vm401_vm7 }
 0x35b   :  { %v2923_v21 = vsel %vm434_vm9, 1.0, %v2784_v19 }
 0x35c   :  { %2512 = vmatprep.mubr.msk.f32.mxu0 %vm142_vm1, %v2923_v21  ;;  %2519 = vmatprep.mubr.msk.f32.mxu1 %vm142_vm1, %v2923_v21  ;;  %v610_v22 = vpack.c.bf16 %v2784_v19, %v2923_v21 }
 0x35d   :  { %2513 = vmatmul.mubr.f32.vlgmr.msra.gmra.mrb[2].mxu0 %v2784_v19  ;;  %2520 = vmatmul.mubr.f32.vlgmr.msra.gmra.mrb[4].mxu1 %v2784_v19 }
 0x35e   :  { %2523 = vmatpush3.bf16.msra.mxu0 %v611_v63  ;;  %v613_v23 = vsel %vm142_vm1, %v610_v22, 0  ;;  %2524 = vmatprep.mubr.msk.bf16.mxu0 %vm2783_vm2, %v2784_v19 }
 0x35f   :  { %2529 = vmatpush3.bf16.xpose.msra.mxu1 %v613_v23  ;;  %2530 = vmatprep.mubr.msk.bf16.mxu1 %vm2783_vm2, %v2784_v19 }
 0x360   :  { %2548 = vmatprep.subr.bf16.mxu1 %v2784_v19  ;;  %2671 = vmatprep.subr.bf16.mxu0 %v2670_v41 }
 0x361   :  { %2525 = vmatmul.mubr.msk.bf16.vlgmr.msra.gmra.mrb[8].mxu0 %vm142_vm1, %v610_v22  ;;  %v38_v22 = vld [vmem:[%s3137_s2 + $0x48] sm:$0x1] }
 0x362   :  { %2673 = vmatpush3.bf16.msra.mxu0 %v2670_v41  ;;  %v944_v23 = vmul.f32 %v38_v22, %v38_v22 }
 0x364   :  { %v945_v24 = vsel %vm302_vm3, %v944_v23, 0.0 }
 0x430   :  { %v2514_v25 = vpop.f32.mrb[2].mxu0  ;;  %v2521_v39 = vpop.f32.mrb[4].mxu1 }
 0x431   :  { %2737 = vtanh.f32 %v2514_v25  ;;  %v512_v26 = vpop.f32.mrb[3].mxu0  ;;  %v589_v46 = vpop.f32.mrb[5].mxu1 }
 0x432   :  { %2739 = vtanh.f32 %v512_v26 }
 0x434   :  { %v649_v27 = vpop.f32.mrb[8].mxu0 }
 0x435   :  { %v2526_v28 = vpop.f32.mrb[9].mxu0 }
 0x436   :  { %v652_v29 = vpop.f32.mrb[10].mxu0 }
 0x437   :  { %v656_v30 = vpack.c.bf16 %v652_v29, %v649_v27  ;;  %v2527_v31 = vpop.f32.mrb[11].mxu0  ;;  %v2359_v29 = vld [vmem:[%s3137_s2 + $0x30] ss:$0 sm:$0xff] }
 0x439   :  { %2531 = vmatmul.mubr.msk.bf16.vlgmr.msra.gmra.mrb[8].mxu1 %vm142_vm1, %v656_v30 }
 0x43a   :  { %2550 = vmatprep.mubr.msk.bf16.mxu1 %vm2783_vm2, %v2784_v19 }
 0x43b   :  { %v2738_v38 = vpop.eup %2737 }
 0x43c   :  { %v2740_v45 = vpop.eup %2739  ;;  %605 = vperm.xlu0 %2730, %v2738_v38  }
 0x43d   :  { %600 = vperm.xlu1 %2729, %v2740_v45  }
 0x4bb   :  { %v606_v47 = vpop.permute.xlu0 %605 }
 0x4bc   :  { %v601_v48 = vpop.permute.xlu1 %600  ;;  %v609_v50 = vmul.f32 %v2521_v39, %v606_v47 }
 0x4bd   :  { %v608_v49 = vmul.f32 %v601_v48, %v589_v46 }
 0x4bf   :  { %2538 = vmatprep.mubr.msk.f32.mxu0 %vm142_vm1, %v608_v49 }
 0x4c0   :  { %2539 = vmatmul.mubr.msk.f32.vlgmr.msra.gmra.mrb[12].mxu0 %vm142_vm1, %v609_v50 }
 0x50c   :  { %v2951_v51 = vpop.f32.mrb[8].mxu1 }
 0x50d   :  { %v2532_v52 = vpop.f32.mrb[9].mxu1  ;;  %2545 = vmatprep.mubr.msk.f32.mxu0 %vm142_vm1, %v2951_v51  ;;  %v782_v53 = vsel %vm142_vm1, %v2951_v51, 0.0  ;;  %v940_v8 = vmul.f32 2.0, %v2951_v51 }
 0x50e   :  { %783 = vadd.xlane.f32.xlu1 %v782_v53  ;;  %v2957_v54 = vpop.f32.mrb[10].mxu1 }
 0x50f   :  { %v2533_v55 = vpop.f32.mrb[11].mxu1  ;;  %v785_v56 = vsel %vm142_vm1, %v2957_v54, 0.0  ;;  %v893_v57 = vpack.c.bf16 %v2957_v54, %v2951_v51  ;;  %v941_v15 = vmul.f32 2.0, %v2957_v54 }
 0x510   :  { %786 = vadd.xlane.f32.xlu0 %v785_v56 }
 0x511   :  { %2549 = vmatpush3.bf16.msra.mxu1 %v893_v57 }
 0x512   :  { %946 = vadd.xlane.f32.xlu1 %v945_v24 }
 0x514   :  { %2551 = vmatmul.mubr.msk.bf16.vlgmr.msra.gmra.mrb[12].mxu1 %vm142_vm1, %v893_v57 }
 0x593   :  { %v2540_v58 = vpop.f32.mrb[12].mxu0 }
 0x594   :  { %v773_v59 = vpop.f32.mrb[13].mxu0 }
 0x59b   :  { %v784_v60 = vpop.xlane.xlu1 %783 }
 0x59c   :  { %v788_v61 = vadd.f32 2.0, %v784_v60 }
 0x59d   :  { %v787_v62 = vpop.xlane.xlu0 %786 }
 0x59e   :  { %2741 = vrsqrt.f32 %v788_v61  ;;  %v789_v63 = vadd.f32 2.0, %v787_v62 }
 0x59f   :  { %v947_v37 = vpop.xlane.xlu1 %946 }
 0x5a0   :  { %2743 = vrsqrt.f32 %v789_v63 }
 0x5a1   :  { %2745 = vrsqrt.f32 %v947_v37 }
 0x5a8   :  { %v2964_v0 = vpop.eup %2741 }
 0x5a9   :  { %v792_v2 = vmul.f32 %v2964_v0, %v773_v59 }
 0x5aa   :  { %v2966_v1 = vpop.eup %2743 }
 0x5ab   :  { %v793_v5 = vmul.f32 %v2966_v1, %v2540_v58  ;;  %v794_v26 = vmul.f32 2.0, %v792_v2  ;;  %v2746_v38 = vpop.eup %2745 }
 0x5ad   :  { %v2674_v6 = vpack.c.bf16 %v793_v5, %v792_v2 }
 0x5af   :  { %2675 = vmatprep.subr.bf16.mxu0 %v2674_v6 }
 0x5b0   :  { %2677 = vmatpush3.bf16.msra.mxu0 %v2674_v6 }
 0x5b1   :  { %2554 = vmatprep.subr.mxu0 %v2784_v19 }
 0x5b3   :  { %2546 = vmatmul.mubr.msk.f32.vlgmr.msra.gmra.mrb[14].mxu0 %vm142_vm1, %v2957_v54 }
 0x5b4   :  { %2556 = vmatprep.mubr.msk.f32.mxu0 %vm2783_vm2, %v2784_v19 }
 0x5e7   :  { %v931_v7 = vpop.f32.mrb[12].mxu1 }
 0x5e8   :  { %v938_v9 = vsel %vm293_vm6, 0.0, %v931_v7  ;;  %v2552_v10 = vpop.f32.mrb[13].mxu1 }
 0x5e9   :  { %v2979_v12 = vadd.f32 %v940_v8, %v938_v9  ;;  %v934_v14 = vpop.f32.mrb[14].mxu1 }
 0x5ea   :  { %v939_v16 = vsel %vm294_vm5, 0.0, %v934_v14  ;;  %v2553_v17 = vpop.f32.mrb[15].mxu1 }
 0x5eb   :  { %v2985_v18 = vadd.f32 %v941_v15, %v939_v16  ;;  %v32_v16 = vld [vmem:[%s3137_s2 + $0x18] sm:$0xff]  ;;  %v33_v17 = vld [vmem:[%s3137_s2 + $0x20] sm:$0xff] }
 0x5ed   :  { %v1249_v20 = vpack.c.bf16 %v2985_v18, %v2979_v12 }
 0x686   :  { %v2547_v25 = vpop.f32.mrb[14].mxu0 }
 0x687   :  { %v868_v27 = vpop.f32.mrb[15].mxu0 }
 0x688   :  { %v869_v28 = vadd.f32 %v868_v27, %v794_v26 }
 0x68a   :  { %v877_v30 = vmul.f32 %v2964_v0, %v869_v28 }
 0x68c   :  { %v883_v31 = vadd.f32 %v2359_v29, %v877_v30 }
 0x68e   :  { %v2997_v32 = vmax.f32 %v883_v31, 0.0 }
 0x690   :  { %2555 = vmatpush3.xpose.msk.msra.mxu0 %vm142_vm1, %v2997_v32  ;;  %2566 = vmatprep.subr.mxu1 %v2997_v32 }
 0x691   :  { %2567 = vmatpush3.msra.mxu1 %v2997_v32 }
 0x692   :  { %2577 = vmatprep.subr.bf16.mxu1 %v2784_v19 }
 0x693   :  { %2557 = vmatmul.mubr.msk.f32.vlgmr.msra.gmra.mrb[16].mxu0 %vm142_vm1, %v38_v22 }
 0x766   :  { %v1024_v39 = vpop.f32.mrb[16].mxu0 }
 0x767   :  { %v1028_v41 = vmul.f32 %v2746_v38, %v1024_v39  ;;  %v2558_v45 = vpop.f32.mrb[17].mxu0 }
 0x769   :  { %v1032_v46 = vrot.slane %v1028_v41, %v389_v44 }
 0x76b   :  { %v1033_v47 = vsel %vm293_vm6, %v1032_v46, 0.0  ;;  %v1034_v49 = vsel %vm294_vm5, %v1032_v46, 0.0  ;;  %vm1068_vm5 = vcmp.lt.s32.totalorder %v2878_v40, 4  ;;  %vm1041_vm6 = vcmp.lt.s32.totalorder %v2883_v43, 8 }
 0x76c   :  { %v1035_v48 = vsel %vm142_vm1, %v1033_v47, 0.0  ;;  %v1038_v50 = vsel %vm142_vm1, %v1034_v49, 0.0 }
 0x76d   :  { %1036 = vadd.xlane.f32.xlu1 %v1035_v48 }
 0x771   :  { %1039 = vadd.xlane.f32.xlu1 %v1038_v50 }
 0x7fa   :  { %v1037_v52 = vpop.xlane.xlu1 %1036 }
 0x7fb   :  { %vm1042_vm3 = vcmp.gt.f32.partialorder %v1037_v52, %v1032_v46  ;;  %vm1044_vm11 = vcmp.eq.f32.partialorder %v1037_v52, %v1032_v46 }
 0x7fc   :  { %vm1046_vm12 = vmand %vm1044_vm11, %vm406_vm10 }
 0x7fd   :  { %vm1048_vm13 = vmor %vm1042_vm3, %vm1046_vm12 }
 0x7fe   :  { %v2363_v44 = vsel %vm1048_vm13, 1.0, %v2784_v19  ;;  %v1040_v53 = vpop.xlane.xlu1 %1039 }
 0x7ff   :  { %v1056_v55 = vsel %vm142_vm1, %v2363_v44, 0.0  ;;  %v2678_v56 = vpack.c.bf16 %v1040_v53, %v1037_v52 }
 0x800   :  { %v1059_v57 = vrot.slane %v1056_v55, 4 }
 0x801   :  { %2679 = vmatprep.subr.bf16.mxu0 %v2678_v56 }
 0x802   :  { %v1060_v42 = vadd.f32 %v1059_v57, %v1056_v55  ;;  %2681 = vmatpush3.bf16.msra.mxu0 %v2678_v56  ;;  %v44_v56 = vld [vmem:[%s3137_s2 + $0x78] sm:$0xff] }
 0x803   :  { %2571 = vmatprep.subr.bf16.mxu0 %v2784_v19 }
 0x804   :  { %v1061_v58 = vrot.slane %v1060_v42, 2 }
 0x806   :  { %v1062_v59 = vadd.f32 %v1061_v58, %v1060_v42 }
 0x808   :  { %v1063_v60 = vrot.slane %v1062_v59, 1 }
 0x80a   :  { %v1064_v61 = vadd.f32 %v1063_v60, %v1062_v59 }
 0x80c   :  { %v2720_v62 = vtrunc.f32 %v1064_v61  ;;  %v2373_v61 = vld [vmem:[%s3137_s2 + $0x38] ss:$0 sm:$0xff] }
 0x80e   :  { %v2721_v63 = vcvt.f32.s32 %v2720_v62 }
 0x810   :  { %vm1066_vm10 = vcmp.eq.s32.totalorder %v2878_v40, %v2721_v63 }
 0x811   :  { %vm1070_vm14 = vmand %vm1066_vm10, %vm1068_vm5 }
 0x812   :  { %vm1072_vm15 = vmand %vm1070_vm14, %vm1041_vm6 }
 0x813   :  { %v2364_v2 = vsel %vm1072_vm15, 1.0, %v2784_v19 }
 0x814   :  { %2563 = vmatprep.mubr.msk.f32.mxu0 %vm142_vm1, %v2364_v2  ;;  %2568 = vmatprep.mubr.msk.f32.mxu1 %vm142_vm1, %v2364_v2  ;;  %v1248_v5 = vpack.c.bf16 %v2784_v19, %v2364_v2 }
 0x815   :  { %2564 = vmatmul.mubr.f32.vlgmr.msra.gmra.mrb[18].mxu0 %v2784_v19  ;;  %2569 = vmatmul.mubr.f32.vlgmr.msra.gmra.mrb[6].mxu1 %v2784_v19 }
 0x816   :  { %2572 = vmatpush3.bf16.msra.mxu0 %v1249_v20  ;;  %v1251_v43 = vsel %vm142_vm1, %v1248_v5, 0  ;;  %2573 = vmatprep.mubr.msk.bf16.mxu0 %vm2783_vm2, %v2784_v19  ;;  %v2682_v20 = vpack.c.bf16 %v33_v17, %v32_v16 }
 0x817   :  { %2578 = vmatpush3.bf16.xpose.msra.mxu1 %v1251_v43  ;;  %2579 = vmatprep.mubr.msk.bf16.mxu1 %vm2783_vm2, %v2784_v19  ;;  %v39_v43 = vld [vmem:[%s3137_s2 + $0x50] sm:$0xff] }
 0x818   :  { %2683 = vmatprep.subr.bf16.mxu0 %v2682_v20 }
 0x819   :  { %2574 = vmatmul.mubr.msk.bf16.vlgmr.msra.gmra.mrb[20].mxu0 %vm142_vm1, %v1248_v5 }
 0x81a   :  { %2685 = vmatpush3.bf16.msra.mxu0 %v2682_v20 }
 0x8e8   :  { %v2565_v6 = vpop.f32.mrb[18].mxu0  ;;  %v2570_v7 = vpop.f32.mrb[6].mxu1 }
 0x8e9   :  { %2747 = vtanh.f32 %v2565_v6  ;;  %v1150_v8 = vpop.f32.mrb[19].mxu0  ;;  %v1227_v23 = vpop.f32.mrb[7].mxu1  ;;  %v40_v6 = vld [vmem:[%s3137_s2 + $0x58] sm:$0xff] }
 0x8ea   :  { %2749 = vtanh.f32 %v1150_v8 }
 0x8ec   :  { %v1287_v9 = vpop.f32.mrb[20].mxu0 }
 0x8ed   :  { %v2575_v10 = vpop.f32.mrb[21].mxu0 }
 0x8ee   :  { %v1290_v12 = vpop.f32.mrb[22].mxu0 }
 0x8ef   :  { %v1294_v14 = vpack.c.bf16 %v1290_v12, %v1287_v9  ;;  %v2576_v15 = vpop.f32.mrb[23].mxu0 }
 0x8f1   :  { %2580 = vmatmul.mubr.msk.bf16.vlgmr.msra.gmra.mrb[16].mxu1 %vm142_vm1, %v1294_v14 }
 0x8f3   :  { %v2748_v18 = vpop.eup %2747 }
 0x8f4   :  { %v2750_v22 = vpop.eup %2749  ;;  %1243 = vperm.xlu0 %2730, %v2748_v18  }
 0x8f5   :  { %1238 = vperm.xlu1 %2729, %v2750_v22  }
 0x973   :  { %v1244_v24 = vpop.permute.xlu0 %1243 }
 0x974   :  { %v1239_v25 = vpop.permute.xlu1 %1238  ;;  %v1247_v27 = vmul.f32 %v2570_v7, %v1244_v24  ;;  %v2694_v7 = vpack.c.bf16 %v40_v6, %v39_v43 }
 0x975   :  { %v1246_v26 = vmul.f32 %v1239_v25, %v1227_v23 }
 0x977   :  { %2587 = vmatprep.mubr.msk.f32.mxu0 %vm142_vm1, %v1246_v26  ;;  %v41_v26 = vld [vmem:[%s3137_s2 + $0x60] sm:$0xff] }
 0x978   :  { %2588 = vmatmul.mubr.msk.f32.vlgmr.msra.gmra.mrb[24].mxu0 %vm142_vm1, %v1247_v27  ;;  %v42_v27 = vld [vmem:[%s3137_s2 + $0x68] sm:$0xff] }
 0x9c4   :  { %v1332_v28 = vpop.f32.mrb[16].mxu1 }
 0x9c5   :  { %v2581_v29 = vpop.f32.mrb[17].mxu1  ;;  %2594 = vmatprep.mubr.msk.f32.mxu0 %vm142_vm1, %v1332_v28  ;;  %v1420_v30 = vsel %vm142_vm1, %v1332_v28, 0.0  ;;  %v2706_v28 = vpack.c.bf16 %v42_v27, %v41_v26 }
 0x9c6   :  { %v1335_v31 = vpop.f32.mrb[18].mxu1  ;;  %1421 = vadd.xlane.f32.xlu1 %v1420_v30 }
 0x9c7   :  { %v2582_v37 = vpop.f32.mrb[19].mxu1  ;;  %v1423_v38 = vsel %vm142_vm1, %v1335_v31, 0.0 }
 0x9c8   :  { %1424 = vadd.xlane.f32.xlu0 %v1423_v38 }
 0x9f5   :  { %1891 = vxpose.xlu0.b32.start.end [1/1] (short) (narrow) %v2923_v21, 16  ;;  %v43_v21 = vld [vmem:[%s3137_s2 + $0x70] sm:$0xff] }
 0x9f6   :  { %v2690_v57 = vpack.c.bf16 %v44_v56, %v43_v21 }
 0x9f9   :  { %1531 = vxpose.xlu1.b32.start.end [1/1] (short) (narrow) %v2364_v2, 16 }
 0xa4b   :  { %v2589_v39 = vpop.f32.mrb[24].mxu0 }
 0xa4c   :  { %v1411_v41 = vpop.f32.mrb[25].mxu0 }
 0xa53   :  { %v1422_v45 = vpop.xlane.xlu1 %1421 }
 0xa54   :  { %v1426_v46 = vadd.f32 2.0, %v1422_v45 }
 0xa55   :  { %v1425_v47 = vpop.xlane.xlu0 %1424 }
 0xa56   :  { %2751 = vrsqrt.f32 %v1426_v46  ;;  %v1427_v48 = vadd.f32 2.0, %v1425_v47  ;;  %v2391_v46 = vld [vmem:[%s3137_s2 + $0x98] ss:$0 sm:$0xff] }
 0xa58   :  { %2753 = vrsqrt.f32 %v1427_v48 }
 0xa60   :  { %v2752_v49 = vpop.eup %2751 }
 0xa61   :  { %v1430_v52 = vmul.f32 %v2752_v49, %v1411_v41 }
 0xa62   :  { %v2754_v50 = vpop.eup %2753 }
 0xa63   :  { %v1431_v44 = vmul.f32 %v2754_v50, %v2589_v39  ;;  %v1432_v58 = vmul.f32 2.0, %v1430_v52  ;;  %v2392_v50 = vld [vmem:[%s3137_s2 + $0xa8] ss:$0 sm:$0xff] }
 0xa65   :  { %v2686_v53 = vpack.c.bf16 %v1431_v44, %v1430_v52 }
 0xa67   :  { %2687 = vmatprep.subr.bf16.mxu0 %v2686_v53 }
 0xa68   :  { %2689 = vmatpush3.bf16.msra.mxu0 %v2686_v53 }
 0xa69   :  { %2691 = vmatprep.subr.bf16.mxu0 %v2690_v57 }
 0xa6b   :  { %2595 = vmatmul.mubr.msk.f32.vlgmr.msra.gmra.mrb[26].mxu0 %vm142_vm1, %v1335_v31 }
 0xa6c   :  { %2693 = vmatpush3.bf16.msra.mxu0 %v2690_v57 }
 0xa6d   :  { %2695 = vmatprep.subr.bf16.mxu0 %v2694_v7 }
 0xa75   :  { %v1907_v15 = vpop.trf.xlu0 }
 0xa79   :  { %v1547_v55 = vpop.trf.xlu1  ;;  %v1908_v25 = vpop.trf.xlu0 }
 0xa7a   :  { %2599 = vmatprep.mubr.msk.f32.mxu1 %vm142_vm1, %v1547_v55 }
 0xa7d   :  { %v1548_v5 = vpop.trf.xlu1 }
 0xb3e   :  { %v2596_v42 = vpop.f32.mrb[26].mxu0 }
 0xb3f   :  { %v1506_v59 = vpop.f32.mrb[27].mxu0 }
 0xb40   :  { %v1507_v60 = vadd.f32 %v1506_v59, %v1432_v58 }
 0xb42   :  { %v1515_v62 = vmul.f32 %v2752_v49, %v1507_v60 }
 0xb44   :  { %v1521_v63 = vadd.f32 %v2373_v61, %v1515_v62 }
 0xb46   :  { %v1523_v2 = vmax.f32 %v1521_v63, 0.0 }
 0xb48   :  { %2597 = vmatprep.subr.msk.mxu1 %vm1068_vm5, %v1523_v2 }
 0xb49   :  { %2598 = vmatpush3.msk.msra.mxu1 %vm1068_vm5, %v1523_v2 }
 0xb4a   :  { %2600 = vmatmul.mubr.msk.f32.vlgmr.msra.gmra.mrb[20].mxu1 %vm142_vm1, %v1548_v5 }
 0xb4b   :  { %2620 = vmatprep.mubr.msk.f32.mxu1 %vm142_vm1, %v2951_v51 }
 0xc1d   :  { %v2601_v8 = vpop.f32.mrb[20].mxu1 }
 0xc1e   :  { %v1635_v9 = vpop.f32.mrb[21].mxu1 }
 0xc1f   :  { %2606 = vmatprep.mubr.msk.f32.mxu0 %vm142_vm1, %v1635_v9 }
 0xc20   :  { %2607 = vmatmul.mubr.msk.f32.vlgmr.msra.gmra.mrb[28].mxu0 %vm142_vm1, %v2601_v8 }
 0xc21   :  { %2613 = vmatprep.mubr.msk.f32.mxu0 %vm142_vm1, %v2997_v32  ;;  %2697 = vmatpush3.bf16.msra.mxu0 %v2694_v7  ;;  %v45_v32 = vld [vmem:[%s3137_s2 + $0x80] sm:$0xff] }
 0xc28   :  { %2614 = vmatmul.mubr.f32.vlgmr.msra.gmra.mrb[28].mxu0 %v2784_v19  ;;  %v46_v19 = vld [vmem:[%s3137_s2 + $0x88] sm:$0xff] }
 0xcfb   :  { %v2615_v40 = vpop.f32.mrb[28].mxu0 }
 0xcfc   :  { %v1801_v51 = vmul.f32 %v2966_v1, %v2615_v40  ;;  %v1791_v10 = vpop.f32.mrb[29].mxu0  ;;  %v2702_v1 = vpack.c.bf16 %v46_v19, %v45_v32 }
 0xcfd   :  { %v1800_v12 = vmul.f32 %v2964_v0, %v1791_v10 }
 0xcfe   :  { %2703 = vmatprep.subr.bf16.mxu0 %v2702_v1 }
 0xcff   :  { %v2698_v14 = vpack.c.bf16 %v1801_v51, %v1800_v12  ;;  %2705 = vmatpush3.bf16.msra.mxu0 %v2702_v1  ;;  %v1802_v17 = vmul.f32 2.0, %v1800_v12 }
 0xd00   :  { %2707 = vmatprep.subr.bf16.mxu0 %v2706_v28 }
 0xd01   :  { %2699 = vmatprep.subr.bf16.mxu1 %v2698_v14 }
 0xd02   :  { %2701 = vmatpush3.bf16.msra.mxu1 %v2698_v14 }
 0xd05   :  { %2621 = vmatmul.mubr.msk.f32.vlgmr.msra.gmra.mrb[22].mxu1 %vm142_vm1, %v2957_v54  ;;  %v2382_v54 = vld [vmem:[%s3137_s2 + $0x90] ss:$0 sm:$0xff] }
 0xd06   :  { %2625 = vmatprep.mubr.msk.f32.mxu1 %vm142_vm1, %v1907_v15 }
 0xdd8   :  { %v2622_v16 = vpop.f32.mrb[22].mxu1 }
 0xdd9   :  { %v1870_v18 = vpop.f32.mrb[23].mxu1 }
 0xdda   :  { %v1871_v20 = vadd.f32 %v1870_v18, %v1802_v17 }
 0xddc   :  { %v1879_v22 = vmul.f32 %v2964_v0, %v1871_v20 }
 0xdde   :  { %v1885_v23 = vadd.f32 %v2382_v54, %v1879_v22 }
 0xde0   :  { %v1887_v24 = vmax.f32 %v1885_v23, 0.0 }
 0xde2   :  { %2623 = vmatprep.subr.mxu1 %v1887_v24 }
 0xde3   :  { %2624 = vmatpush3.msra.mxu1 %v1887_v24 }
 0xde4   :  { %2626 = vmatmul.mubr.msk.f32.vlgmr.msra.gmra.mrb[24].mxu1 %vm142_vm1, %v1908_v25 }
 0xde5   :  { %2646 = vmatprep.mubr.msk.f32.mxu1 %vm142_vm1, %v2828_v3 }
 0xeb7   :  { %v2627_v0 = vpop.f32.mrb[24].mxu1 }
 0xeb8   :  { %v1995_v29 = vpop.f32.mrb[25].mxu1 }
 0xeb9   :  { %2632 = vmatprep.mubr.msk.f32.mxu0 %vm142_vm1, %v1995_v29 }
 0xeba   :  { %2633 = vmatmul.mubr.msk.f32.vlgmr.msra.gmra.mrb[30].mxu0 %vm142_vm1, %v2627_v0 }
 0xebb   :  { %2639 = vmatprep.mubr.msk.f32.mxu0 %vm142_vm1, %v246_v36  ;;  %2709 = vmatpush3.bf16.msra.mxu0 %v2706_v28 }
 0xec2   :  { %2640 = vmatmul.mubr.msk.f32.vlgmr.msra.gmra.mrb[30].mxu0 %vm142_vm1, %v247_v35 }
 0xf95   :  { %v2641_v3 = vpop.f32.mrb[30].mxu0 }
 0xf96   :  { %v2161_v30 = vmul.f32 %v2839_v11, %v2641_v3  ;;  %v2151_v31 = vpop.f32.mrb[31].mxu0 }
 0xf97   :  { %v2160_v37 = vmul.f32 %v2841_v13, %v2151_v31 }
 0xf98   :  { %v2163_v33 = vmul.f32 2.0, %v2161_v30 }
 0xf99   :  { %v2710_v38 = vpack.c.bf16 %v2161_v30, %v2160_v37  ;;  %v2162_v36 = vmul.f32 2.0, %v2160_v37 }
 0xf9b   :  { %2711 = vmatprep.subr.bf16.mxu1 %v2710_v38 }
 0xf9c   :  { %2713 = vmatpush3.bf16.msra.mxu1 %v2710_v38 }
 0xf9d   :  { %2649 = vmatprep.subr.mxu1 %v49_v34 }
 0xf9f   :  { %2647 = vmatmul.mubr.msk.f32.vlgmr.msra.gmra.mrb[26].mxu1 %vm142_vm1, %v2830_v4 }
 0xfa0   :  { %2650 = vmatpush3.msra.mxu1 %v49_v34 }
0x1072   :  { %v2648_v35 = vpop.f32.mrb[26].mxu1 }
0x1073   :  { %v2236_v39 = vadd.f32 %v2648_v35, %v2163_v33  ;;  %v2230_v41 = vpop.f32.mrb[27].mxu1 }
0x1074   :  { %v2231_v45 = vadd.f32 %v2230_v41, %v2162_v36 }
0x1075   :  { %v2240_v47 = vmul.f32 %v2839_v11, %v2236_v39 }
0x1076   :  { %v2239_v4 = vmul.f32 %v2841_v13, %v2231_v45 }
0x1077   :  { %v2246_v49 = vadd.f32 %v2391_v46, %v2240_v47 }
0x1078   :  { %v2245_v48 = vadd.f32 %v2391_v46, %v2239_v4 }
0x107a   :  { %2651 = vmatprep.mubr.msk.f32.mxu1 %vm60_vm0, %v2245_v48 }
0x107b   :  { %2652 = vmatmul.mubr.msk.f32.vlgmr.msra.gmra.mrb[28].mxu1 %vm60_vm0, %v2246_v49 }
0x114e   :  { %v2653_v52 = vpop.f32.mrb[28].mxu1 }
0x114f   :  { %v2329_v44 = vadd.f32 %v2653_v52, %v2392_v50  ;;  %v2323_v53 = vpop.f32.mrb[29].mxu1 }
0x1150   :  { %v2324_v55 = vadd.f32 %v2392_v50, %v2323_v53 }
0x1151   :  { %2333 = vst [vmem:[%s3138_s3 + $0x8] sm:$0xff] %v2329_v44 }
0x1152   :  { %2332 = vst [vmem:[%s3138_s3] sm:$0xff] %v2324_v55 }
0x1153   :  { %2338 = vsyncpa [#allocation3], 1 }

</bundles_post_ra>
